<compile_context>
chip_gen: v6e
topology: v6e:2x2x1
jax: 0.10.0
libtpu: 0.0.40
codegen_flags: <defaults>
</compile_context>

<pallas_src>
import functools

import jax
import jax.numpy as jnp
from jax.experimental import pallas as pl
from jax.experimental.pallas import tpu as pltpu


def _embed_action_kernel(ids_ref, emb_ref, out_ref, *, n_uncond_zero):
    """ids_ref: (bs,) int32 SMEM; emb_ref: (n_act, d) VMEM; out_ref: (bs, d) VMEM."""
    bs, d = out_ref.shape

    # Classifier-free-guidance uncond rows (first torch.chunk(2) chunk,
    # ceil(bs/2) rows): one static-offset block store of zeros.
    if n_uncond_zero > 0:
        out_ref[pl.ds(0, n_uncond_zero), :] = jnp.zeros(
            (n_uncond_zero, d), dtype=out_ref.dtype
        )

    # Remaining rows: exact embedding-row copies via dynamic row loads
    # (no MXU, no one-hot).  bs is tiny for this module, so the static unroll
    # over SMEM scalar reads is cheap; for large CFG batches switch this to a
    # fori_loop / gridded variant (see header note).
    for i in range(n_uncond_zero, bs):
        idx = ids_ref[i]  # SMEM scalar read
        out_ref[pl.ds(i, 1), :] = emb_ref[pl.ds(idx, 1), :]


def embed_action_forward(
    x,
    action_embedding,
    *,
    guidance_scale=7.5,
    force_mask=False,
    training=False,
):
    """x: (bs, k) int array, action ids in column 0.  Returns (1, bs, latent_dim)."""
    bs = x.shape[0]
    num_actions, latent_dim = action_embedding.shape
    out_dtype = action_embedding.dtype

    # force_mask -> whole output is zeros; skip the kernel launch entirely.
    if force_mask:
        return jnp.zeros((1, bs, latent_dim), dtype=out_dtype)

    # Eval-mode CFG path: first torch.chunk(2) chunk (ceil(bs/2) rows) is zeroed.
    n_uncond_zero = (bs + 1) // 2 if (not training) and (guidance_scale > 1.0) else 0

    # Only the id column, as a flat 1D int32 array on the SMEM scalar path.
    ids = x[:, 0].astype(jnp.int32)

    kernel = functools.partial(_embed_action_kernel, n_uncond_zero=n_uncond_zero)

    out = pl.pallas_call(
        kernel,
        out_shape=jax.ShapeDtypeStruct((bs, latent_dim), out_dtype),
        in_specs=[
            pl.BlockSpec(memory_space=pltpu.MemorySpace.SMEM),  # action ids
            pl.BlockSpec(memory_space=pltpu.MemorySpace.VMEM),  # full (tiny) table
        ],
        out_specs=pl.BlockSpec(memory_space=pltpu.MemorySpace.VMEM),
    )(ids, action_embedding)

    return out[None]  # unsqueeze(0) -> (1, bs, latent_dim); free layout metadata


def _reference(x, action_embedding, *, guidance_scale=7.5, force_mask=False):
    # Pure-JAX eval-mode reference, mirroring the PyTorch forward.
    idx = x[:, 0].astype(jnp.int32)
    out = action_embedding[idx]
    if force_mask:
        return jnp.zeros_like(out)[None]
    if guidance_scale > 1.0:
        n_uncond = (out.shape[0] + 1) // 2  # torch.chunk(2) first-chunk size
        out = out.at[:n_uncond].set(0.0)
    return out[None]


if __name__ == "__main__":
    num_actions = 12
    latent_dim = 32
    bs = 4  # CFG duplicates the batch -> even bs, same assumption as the PyTorch usage

    key = jax.random.PRNGKey(0)
    k_emb, k_idx = jax.random.split(key)

    # Deterministic xavier_uniform init: bound = sqrt(6 / (fan_in + fan_out)).
    bound = (6.0 / (num_actions + latent_dim)) ** 0.5
    action_embedding = jax.random.uniform(
        k_emb, (num_actions, latent_dim), jnp.float32, -bound, bound
    )

    # Module input: (bs, 1) tensor of action ids (column 0 is used).
    x = jax.random.randint(k_idx, (bs, 1), 0, num_actions, dtype=jnp.int32)

    # Eval-mode CFG path (guidance_scale > 1): first half zeroed.
    out = jax.block_until_ready(embed_action_forward(x, action_embedding))
    ref = _reference(x, action_embedding)
    assert out.shape == (1, bs, latent_dim), out.shape
    assert jnp.allclose(out, ref, atol=0.0, rtol=0.0), "mismatch vs reference (CFG path)"

    # No-guidance path (guidance_scale <= 1): plain embedding lookup (bit-exact copy).
    out_ng = jax.block_until_ready(
        embed_action_forward(x, action_embedding, guidance_scale=1.0)
    )
    ref_ng = _reference(x, action_embedding, guidance_scale=1.0)
    assert jnp.allclose(out_ng, ref_ng, atol=0.0, rtol=0.0), "mismatch vs reference (no-CFG)"

    # force_mask path: no kernel launch, all zeros.
    out_fm = jax.block_until_ready(
        embed_action_forward(x, action_embedding, force_mask=True)
    )
    assert out_fm.shape == (1, bs, latent_dim) and bool(jnp.all(out_fm == 0.0))

    print("KERNEL_OK")
</pallas_src>

<mosaic_0001>
module attributes {stable_mosaic.version = 11 : i64} {
  func.func @_embed_action_kernel(%arg0: memref<4xi32, #tpu.memory_space<smem>>, %arg1: memref<12x32xf32, #tpu.memory_space<vmem>>, %arg2: memref<4x32xf32, #tpu.memory_space<vmem>>) attributes {dimension_semantics = [], scalar_prefetch = 0 : i64, scratch_operands = 0 : i64, tpu.core_type = #tpu.core_type<tc>} {
    %cst = arith.constant 0.000000e+00 : f32
    %0 = vector.broadcast %cst : f32 to vector<2x32xf32>
    %c0 = arith.constant 0 : index
    %c0_0 = arith.constant 0 : index
    %1 = vector.load %arg2[%c0, %c0_0] : memref<4x32xf32, #tpu.memory_space<vmem>>, vector<2x32xf32>
    tpu.vector_store %arg2[%c0, %c0_0], %0 {strides = array<i32>} : memref<4x32xf32, #tpu.memory_space<vmem>>, vector<2x32xf32>,
    %c2 = arith.constant 2 : index
    %2 = memref.load %arg0[%c2] : memref<4xi32, #tpu.memory_space<smem>>
    %3 = arith.index_cast %2 : i32 to index
    %c0_1 = arith.constant 0 : index
    %4 = vector.load %arg1[%3, %c0_1] : memref<12x32xf32, #tpu.memory_space<vmem>>, vector<1x32xf32>
    %c2_2 = arith.constant 2 : index
    %c0_3 = arith.constant 0 : index
    %5 = vector.load %arg2[%c2_2, %c0_3] : memref<4x32xf32, #tpu.memory_space<vmem>>, vector<1x32xf32>
    tpu.vector_store %arg2[%c2_2, %c0_3], %4 {strides = array<i32>} : memref<4x32xf32, #tpu.memory_space<vmem>>, vector<1x32xf32>,
    %c3 = arith.constant 3 : index
    %6 = memref.load %arg0[%c3] : memref<4xi32, #tpu.memory_space<smem>>
    %7 = arith.index_cast %6 : i32 to index
    %c0_4 = arith.constant 0 : index
    %8 = vector.load %arg1[%7, %c0_4] : memref<12x32xf32, #tpu.memory_space<vmem>>, vector<1x32xf32>
    %c3_5 = arith.constant 3 : index
    %c0_6 = arith.constant 0 : index
    %9 = vector.load %arg2[%c3_5, %c0_6] : memref<4x32xf32, #tpu.memory_space<vmem>>, vector<1x32xf32>
    tpu.vector_store %arg2[%c3_5, %c0_6], %8 {strides = array<i32>} : memref<4x32xf32, #tpu.memory_space<vmem>>, vector<1x32xf32>,
    return
  }
}

</mosaic_0001>

<bundles_post_ra>
// kernel: tpu_custom_call.1
= control target key start
LH: loop header
LB: loop body
LE: loop exit
PB: predicated region body
PF: predicated region fallthrough
CT: control target
= control target key end

     0   :  { %7 = vsyncpa [#allocation5], 0  ;;  %s158_s0 = inlined_call_operand.hbm [shape: s32[4], index: 0, kind: input, shape index: {}]   ;;  %s159_s1 = inlined_call_operand.hbm [shape: f32[12,32], index: 1, kind: input, shape index: {}]   ;;  %s160_s2 = inlined_call_operand.hbm [shape: f32[4,32], index: 2, kind: output, shape index: {}]  }
   0x1   :  { %8 = vsyncpa [#allocation3], 0 }
   0x2   :  { %9 = vsyncpa [#allocation4], 0  ;;  %s128_s9 = smov [#allocation2]   ;;  %s129_s12 = smov [#allocation6]  }
   0x3   :  { %17 = dma.hbm_to_smem %s158_s0, 16, %s128_s9, [#allocation5]  }
   0x4   :  { %s23_s13 = sshll.u32 %s129_s12, 4  ;;  %s24_s13 = int_to_ptr.vmem [resolvable:$true] %s23_s13 }
   0x5   :  { %s90_s14 = scalar_lea.vmem %s24_s13, 256  ;;  %p95_p1 = scmp.lt.s32.totalorder %s24_s13, %s24_s13 }
   0x6   :  { %p91_p0 = scmp.ne.s32.totalorder %s24_s13, %s90_s14  ;;  %p96_p2 = scmp.lt.s32.totalorder %s90_s14, %s90_s14 }
   0x8   :  { %p97_p3 = por %p96_p2, %p95_p1 }
   0xa   :  { %p98_p4 = pnand %p97_p3, %p91_p0 }
   0xc   :  { %101 = shalt.err (!%p98_p4)
}
   0xd   :  { %s130_s15 = smov 128   ;;  %s131_s16 = smov 8  }
   0xe   :  { %29 = dma.hbm_to_vmem [thread:$0]  %s159_s1, 256, %s24_s13, [#allocation3], %s130_s15, %s130_s15, %s131_s16  }
   0xf   :  { %122 = dma.done.wait [#allocation5], 16  }
  0x10   :  { %123 = vsyncadd [#allocation5], 4294967280 }
  0x11   :  { %124 = dma.done.wait [#allocation3], 256  }
  0x12   :  { %125 = vsyncadd [#allocation3], 4294967040 }
  0x13   :  { %36 = sfence }
  0x14   :  { %vm37_vm0 = vcmask 254976   ;;  %s66_s0 = sld [smem:[#allocation2 + $0x2]]  ;;  %v132_v0 = vmov 0.0   ;;  %s133_s20 = smov [#allocation7]   ;;  %vm42_vm1 = vcmask 253952  }
  0x15   :  { %38 = vst.msk [vmem:[#allocation7] sm:$0x3] %vm37_vm0, %v132_v0  ;;  %s67_s19 = sld [smem:[#allocation2 + $0x3]]  ;;  %s54_s21 = sshll.u32 %s133_s20, 4  ;;  %s55_s21 = int_to_ptr.vmem [resolvable:$true] %s54_s21 }
  0x16   :  { %s102_s1 = scalar_lea.vmem %s55_s21, 64  ;;  %p107_p6 = scmp.lt.s32.totalorder %s55_s21, %s55_s21 }
  0x17   :  { %p103_p5 = scmp.ne.s32.totalorder %s55_s21, %s102_s1  ;;  %p108_p7 = scmp.lt.s32.totalorder %s102_s1, %s102_s1 }
  0x19   :  { %p109_p8 = por %p108_p7, %p107_p6 }
  0x1a   :  { %s40_s22 = scalar_lea.vmem [#allocation6], %s66_s0 }
  0x1b   :  { %v41_v1 = vld [vmem:[%s40_s22] sm:$0x1]  ;;  %s45_s23 = scalar_lea.vmem [#allocation6], %s67_s19  ;;  %p110_p9 = pnand %p109_p8, %p103_p5 }
  0x1c   :  { %43 = vst.msk [vmem:[#allocation7 + $0x2] sm:$0x1] %vm42_vm1, %v41_v1  ;;  %v46_v2 = vld [vmem:[%s45_s23] sm:$0x1] }
  0x1d   :  { %47 = vst.msk [vmem:[#allocation7 + $0x3] sm:$0x1] %vm42_vm1, %v46_v2 }
  0x1e   :  { %113 = shalt.err (!%p110_p9)
}
  0x1f   :  { %57 = dma.vmem_to_hbm [thread:$0]  %s55_s21, 64, %s160_s2, [#allocation4]  }
  0x20   :  { %126 = dma.done.wait [#allocation4], 64  }
  0x21   :  { %127 = vsyncadd [#allocation4], 4294967232 }
  0x22   :  { %61 = vsyncpa [#allocation3], 1 }
  0x23   :  { %62 = vsyncpa [#allocation4], 1 }
  0x24   :  { %63 = vsyncpa [#allocation5], 1 }

</bundles_post_ra>
